<compile_context>
chip_gen: v5e
topology: v5e:2x2
jax: 0.10.0
libtpu: 0.0.40
codegen_flags: <defaults>
</compile_context>

<pallas_src>
import functools

import numpy as np

import jax
import jax.numpy as jnp
from jax.experimental import pallas as pl
from jax.experimental.pallas import tpu as pltpu


_S = 8  # sublane extent of one (8, 128) vreg tile

# (lanes, sub_tiles) candidates, largest time-tile first.  lanes is capped at 1024
# so the per-sub-tile working set (best/idx/row slabs) stays comfortably inside the
# 64-vreg budget; sub_tiles grows the DMA block (amortizing per-grid-step overhead)
# without growing vreg pressure.
_TILE_CANDIDATES = (
    (1024, 8), (1024, 4), (1024, 2), (1024, 1),
    (512, 1), (256, 1), (128, 1),
)


def _choose_tiling(T, L, itemsize, max_block_bytes=4 << 20, max_pad_frac=0.125):
    """Largest time tile whose padding overhead is <= ~12% of T and whose emission
    block is <= max_block_bytes (double-buffered this stays far under the 32 MiB
    scoped-VMEM default on every generation).  Falls back to the minimal
    (128, 1) tile (1024 timesteps) for short / awkward T."""
    for lanes, sub in _TILE_CANDIDATES:
        tile_t = _S * lanes * sub
        if tile_t * L * itemsize > max_block_bytes:
            continue
        nt = -(-T // tile_t)
        if nt * tile_t - T <= max_pad_frac * T:
            return lanes, sub
    return 128, 1


def _make_kernel(num_labels: int, blank: int, lanes: int, sub_tiles: int,
                 label_major: bool):
    def load_row(e_ref, g, l):
        if label_major:
            r = e_ref[l, g * _S:(g + 1) * _S, :]
        else:
            base = (g * num_labels + l) * _S
            r = e_ref[base:base + _S, :]
        # torch.argmax treats NaN as the maximum; canonicalize NaN -> +inf so a NaN
        # row can never yield an out-of-range index (host label lookup stays safe).
        return jnp.where(jnp.isnan(r), jnp.inf, r)

    def kernel(prev_ref, e_ref, out_ref):
        b = pl.program_id(0)
        t = pl.program_id(1)
        # argmax index of the timestep just before this tile (-1 sentinel for the
        # first tile), precomputed in the wrapper and scalar-prefetched into SMEM.
        # This halo replaces the old sequential cross-tile VMEM carry, so both grid
        # axes are "parallel" (B=1 decodes can use both v7x TensorCores).
        carry = prev_ref[b * pl.num_programs(1) + t]

        sub_iota = jax.lax.broadcasted_iota(jnp.int32, (_S, 1), 0)        # hoisted
        lane_iota = jax.lax.broadcasted_iota(jnp.int32, (_S, lanes), 1)   # out of loops

        for g in range(sub_tiles):
            # First-occurrence argmax over labels, unrolled.  Per-row loads (plus
            # per-row NaN canonicalization) keep only ~3 (8, lanes) slabs live and
            # let Mosaic schedule each load next to its use: full-vreg VPU work,
            # no cross-lane reductions, MXU untouched.
            best = load_row(e_ref, g, 0)
            idx = jnp.zeros((_S, lanes), jnp.int32)
            for l in range(1, num_labels):
                row = load_row(e_ref, g, l)
                upd = row > best
                best = jnp.where(upd, row, best)
                idx = jnp.where(upd, jnp.int32(l), idx)

            # prev[t] = idx[t-1]; within a sub-tile, time = (g*8 + s)*lanes + j.
            # Rolls run on the XLU (free slot next to the VPU argmax work); only the
            # last 128-lane vreg is rolled on the sublane axis, not the whole tile.
            rolled = pltpu.roll(idx, shift=1, axis=1)            # (s, j) <- idx[s, j-1]
            tail = pltpu.roll(idx[:, lanes - 128:], shift=1, axis=0)
            prev_col = tail[:, 127:128]                          # (8,1) = idx[s-1, lanes-1]
            prev_col = jnp.where(sub_iota == 0, carry, prev_col)  # sub-tile's first step
            prev = jnp.where(lane_iota == 0, prev_col, rolled)    # fix the lane-0 column

            keep = jnp.logical_and(idx != jnp.int32(blank), idx != prev)
            # Lane-dense packed output: idx in the low 16 bits, keep flag in bit 16
            # -> unmasked full-vreg stores (keeps v5e's single store slot unbound).
            out_ref[g * _S:(g + 1) * _S, :] = (
                idx + keep.astype(jnp.int32) * jnp.int32(1 << 16))

            # in-register carry of this sub-tile's last argmax into the next one
            carry = idx[_S - 1:_S, lanes - 1:lanes]

    return kernel


@functools.partial(
    jax.jit,
    static_argnames=("blank", "label_major", "cast_bf16", "tile_lanes", "tile_sub"))
def _greedy_ctc_forward_batched(emission, blank=0, label_major=False, cast_bf16=True,
                                tile_lanes=None, tile_sub=None):
    """emission: (B, T, L) [or (B, L, T) if label_major] -> (B, T) int32 packed codes."""
    if label_major:
        B, L, T = emission.shape
    else:
        B, T, L = emission.shape

    # bf16 by default: the kernel is HBM-bound and this cast fuses into the
    # (time-major) relayout copy, halving both the copy and the kernel read.
    # The label-major path is already copy-free, so keep the caller's dtype there
    # (producers wanting the full win should emit bf16, label-major directly).
    if cast_bf16 and not label_major and emission.dtype == jnp.float32:
        emission = emission.astype(jnp.bfloat16)

    if tile_lanes is not None or tile_sub is not None:
        lanes = 128 if tile_lanes is None else tile_lanes
        sub = 1 if tile_sub is None else tile_sub
    else:
        lanes, sub = _choose_tiling(T, L, emission.dtype.itemsize)
    assert lanes % 128 == 0 and sub >= 1
    tile_t = _S * lanes * sub
    nt = -(-T // tile_t)
    t_pad = nt * tile_t

    # Halo replacing the sequential cross-tile carry: argmax of the last timestep
    # of every preceding tile (tiny strided gather + argmax, computed on the same
    # dtype/values the kernel sees so near-tie results agree exactly).
    if label_major:
        boundary = emission[:, :, tile_t - 1::tile_t][:, :, :nt - 1]
        boundary = jnp.swapaxes(boundary, 1, 2)                    # (B, nt-1, L)
    else:
        boundary = emission[:, tile_t - 1::tile_t, :][:, :nt - 1, :]
    boundary = jnp.where(jnp.isnan(boundary), jnp.inf, boundary)
    prev_last = jnp.argmax(boundary, axis=-1).astype(jnp.int32)    # (B, nt-1)
    prev_last = jnp.concatenate(
        [jnp.full((B, 1), -1, jnp.int32), prev_last], axis=1)      # (B, nt)
    prev_flat = prev_last.reshape(B * nt)

    if label_major:
        # Zero-copy layout: (B, L, T) reshapes (no transpose) straight into
        # lane-dense (sub*8, lanes) time tiles; the BlockSpec DMA performs the
        # strided per-label gather.
        if t_pad != T:
            emission = jnp.pad(emission, ((0, 0), (0, 0), (0, t_pad - T)))
        e = emission.reshape(B, L, nt * sub * _S, lanes)
        in_spec = pl.BlockSpec((None, L, sub * _S, lanes),
                               lambda b, t, prev: (b, 0, t, 0))
    else:
        # Time-major input needs exactly one relayout copy (label-major rows, time
        # on (sublane, lane)); the bf16 cast above fuses into it so the pre-pass
        # moves half the bytes.  Padding is kept <= ~12% by _choose_tiling.
        if t_pad != T:
            emission = jnp.pad(emission, ((0, 0), (0, t_pad - T), (0, 0)))
        e = emission.reshape(B, nt, sub, _S, lanes, L)
        e = jnp.transpose(e, (0, 1, 2, 5, 3, 4)).reshape(B, nt, sub * L * _S, lanes)
        in_spec = pl.BlockSpec((None, None, sub * L * _S, lanes),
                               lambda b, t, prev: (b, t, 0, 0))

    packed = pl.pallas_call(
        _make_kernel(L, blank, lanes, sub, label_major),
        out_shape=jax.ShapeDtypeStruct((B, nt, sub * _S, lanes), jnp.int32),
        grid_spec=pltpu.PrefetchScalarGridSpec(
            num_scalar_prefetch=1,
            grid=(B, nt),
            in_specs=[in_spec],
            out_specs=pl.BlockSpec((None, None, sub * _S, lanes),
                                   lambda b, t, prev: (b, t, 0, 0)),
        ),
        compiler_params=pltpu.CompilerParams(
            dimension_semantics=("parallel", "parallel"),
            vmem_limit_bytes=32 * 1024 * 1024),  # double-buffering headroom only
    )(prev_flat, e)
    return packed.reshape(B, t_pad)[:, :T]


def greedy_ctc_forward(emission, blank: int = 0, *, label_major=False, cast_bf16=True,
                       tile_lanes=None, tile_sub=None):
    """Packed per-timestep codes (idx | keep<<16) for (T, L)/(B, T, L) input,
    or (L, T)/(B, L, T) when label_major=True."""
    assert blank >= 0, "blank must be a non-negative label index"
    single = emission.ndim == 2
    if single:
        emission = emission[None]
    L = emission.shape[1] if label_major else emission.shape[-1]
    assert L <= 0xFFFF, "label count must fit in 16 bits for packing"
    codes = _greedy_ctc_forward_batched(
        emission, blank=blank, label_major=label_major, cast_bf16=cast_bf16,
        tile_lanes=tile_lanes, tile_sub=tile_sub)
    return codes[0] if single else codes


def greedy_ctc_indices(emission, blank: int = 0, **kwargs):
    """(argmax indices, keep mask) in time order, computed on-TPU."""
    codes = greedy_ctc_forward(emission, blank=blank, **kwargs)
    return codes & 0xFFFF, codes >> 16


def greedy_ctc_decode(emission, labels, blank: int = 0, **kwargs):
    """Full GreedyCTCDecoder.forward semantics for one (T, L) emission -> List[str]."""
    codes = np.asarray(jax.device_get(
        greedy_ctc_forward(emission, blank=blank, **kwargs)))  # single small D2H read
    idx = codes & 0xFFFF
    keep = codes >> 16
    # TODO(synk): label lookup / string join producing List[str] has no Pallas equivalent; host-side.
    joined = ''.join(labels[int(i)] for i, k in zip(idx, keep) if k)
    return joined.replace('|', ' ').strip().split()


def _ref_decode(em, labels, blank=0):
    """numpy reference of the torch forward (argmax -> unique_consecutive -> drop blank)."""
    ind = np.argmax(np.asarray(em, dtype=np.float32), axis=-1)
    out, prev = [], None
    for i in ind:
        if i != prev:
            out.append(int(i))
        prev = i
    joined = ''.join(labels[i] for i in out if i != blank)
    return joined.replace('|', ' ').strip().split()


def _check_indices(idx, keep, em_f32, blank=0, tag=""):
    em = jnp.asarray(em_f32, jnp.float32)
    ref_idx = jnp.argmax(jnp.where(jnp.isnan(em), jnp.inf, em), axis=-1).astype(jnp.int32)
    prev = jnp.concatenate(
        [jnp.full(ref_idx.shape[:-1] + (1,), -1, jnp.int32), ref_idx[..., :-1]], axis=-1)
    ref_keep = (ref_idx != blank) & (ref_idx != prev)
    assert bool(jnp.all(idx == ref_idx)), f"argmax mismatch {tag}"
    assert bool(jnp.all((keep != 0) == ref_keep)), f"keep mismatch {tag}"


if __name__ == "__main__":
    # num_label = 32 (blank index 0, '|' is the word separator)
    labels = ['-'] + list("abcdefghijklmnopqrstuvwxyz") + ["|", "'", ".", ",", "?"]
    assert len(labels) == 32
    L = 32

    key = jax.random.PRNGKey(0)
    k1, k2, k3, k4 = jax.random.split(key, 4)

    # --- small shape matching the module docstring: [num_seq, num_label] = [8, 32]
    T = 8
    emission = jax.random.normal(k1, (T, L), dtype=jnp.float32)
    em_seen = emission.astype(jnp.bfloat16).astype(jnp.float32)  # values the bf16 path sees
    words = greedy_ctc_decode(emission, labels, blank=0)
    assert words == _ref_decode(np.asarray(em_seen), labels, blank=0), "decode mismatch"
    idx, keep = greedy_ctc_indices(emission, blank=0)
    jax.block_until_ready((idx, keep))
    _check_indices(idx, keep, em_seen, tag="(T=8)")

    # --- longer sequence: multiple time tiles + the SMEM halo replacing the carry
    T2 = 2500
    emission2 = jax.random.normal(k2, (T2, L), dtype=jnp.float32)
    emission2 = emission2.at[:, 0].add(2.0)  # make blanks / repeats likely
    em2_seen = emission2.astype(jnp.bfloat16).astype(jnp.float32)
    idx2, keep2 = greedy_ctc_indices(emission2, blank=0)
    jax.block_until_ready((idx2, keep2))
    _check_indices(idx2, keep2, em2_seen, tag="(T=2500, bf16)")

    # --- exact f32 path (matches the f32 torch argmax bit-for-bit, no bf16 rounding)
    idx2f, keep2f = greedy_ctc_indices(emission2, blank=0, cast_bf16=False)
    jax.block_until_ready((idx2f, keep2f))
    _check_indices(idx2f, keep2f, emission2, tag="(T=2500, f32)")

    # --- batched utterances (B, T, L): single pallas_call, both grid axes "parallel"
    B, T3 = 2, 300
    emission3 = jax.random.normal(k3, (B, T3, L), dtype=jnp.float32)
    idx3, keep3 = greedy_ctc_indices(emission3, blank=0)
    jax.block_until_ready((idx3, keep3))
    _check_indices(idx3, keep3, emission3.astype(jnp.bfloat16).astype(jnp.float32),
                   tag="(batched)")

    # --- label-major (L, T) zero-copy path: no wrapper transpose at all
    em2_b16 = emission2.astype(jnp.bfloat16)
    ia, ka = greedy_ctc_indices(em2_b16, blank=0)
    ib, kb = greedy_ctc_indices(em2_b16.T, blank=0, label_major=True)
    jax.block_until_ready((ib, kb))
    assert bool(jnp.all(ia == ib)) and bool(jnp.all((ka != 0) == (kb != 0))), \
        "label-major path mismatch"

    # --- wide lanes (1024) and multi-sub-tile blocks (in-register sub-tile carry)
    T4 = 8192
    emission4 = jax.random.normal(k4, (T4, L), dtype=jnp.float32)
    em4_seen = emission4.astype(jnp.bfloat16).astype(jnp.float32)
    idx4, keep4 = greedy_ctc_indices(emission4, blank=0)  # heuristic -> lanes=1024, sub=1
    jax.block_until_ready((idx4, keep4))
    _check_indices(idx4, keep4, em4_seen, tag="(T=8192, wide)")
    idx5, keep5 = greedy_ctc_indices(emission4, blank=0, tile_lanes=256, tile_sub=2)
    jax.block_until_ready((idx5, keep5))
    _check_indices(idx5, keep5, em4_seen, tag="(T=8192, sub-tiled)")

    print("KERNEL_OK")
</pallas_src>

<mosaic_0001>
module attributes {stable_mosaic.version = 11 : i64} {
  func.func @kernel(%arg0: i32, %arg1: i32, %arg2: memref<1xi32, #tpu.memory_space<smem>>, %arg3: memref<1x1x256x128xbf16, #tpu.memory_space<vmem>>, %arg4: memref<1x1x8x128xi32, #tpu.memory_space<vmem>>) attributes {dimension_semantics = [#tpu.dimension_semantics<parallel>, #tpu.dimension_semantics<parallel>], iteration_bounds = array<i64: 1, 1>, scalar_prefetch = 1 : i64, scratch_operands = 0 : i64, tpu.core_type = #tpu.core_type<tc>, window_params = [{transform_indices = @transform_0, window_bounds = array<i64: 1, 1, 256, 128>}, {transform_indices = @transform_1, window_bounds = array<i64: 1, 1, 8, 128>}]} {
    %c1_i32 = arith.constant 1 : i32
    %0 = arith.muli %arg0, %c1_i32 : i32
    %1 = arith.addi %0, %arg1 : i32
    %2 = arith.index_cast %1 : i32 to index
    %3 = memref.load %arg2[%2] : memref<1xi32, #tpu.memory_space<smem>>
    %4 = tpu.iota {dimensions = array<i32: 0>} : vector<8x1xi32>
    %5 = tpu.iota {dimensions = array<i32: 1>} : vector<8x128xi32>
    %c0 = arith.constant 0 : index
    %c0_0 = arith.constant 0 : index
    %c0_1 = arith.constant 0 : index
    %c0_2 = arith.constant 0 : index
    %6 = vector.load %arg3[%c0, %c0_0, %c0_1, %c0_2] : memref<1x1x256x128xbf16, #tpu.memory_space<vmem>>, vector<1x1x8x128xbf16>
    %7 = vector.shape_cast %6 : vector<1x1x8x128xbf16> to vector<8x128xbf16>
    %8 = arith.cmpf one, %7, %7 : vector<8x128xbf16>
    %cst = arith.constant 0x7F800000 : f32
    %9 = arith.truncf %cst : f32 to bf16
    %10 = vector.broadcast %9 : bf16 to vector<8x128xbf16>
    %11 = arith.select %8, %10, %7 : vector<8x128xi1>, vector<8x128xbf16>
    %c0_i32 = arith.constant 0 : i32
    %12 = vector.broadcast %c0_i32 : i32 to vector<8x128xi32>
    %c0_3 = arith.constant 0 : index
    %c0_4 = arith.constant 0 : index
    %c8 = arith.constant 8 : index
    %c0_5 = arith.constant 0 : index
    %13 = vector.load %arg3[%c0_3, %c0_4, %c8, %c0_5] : memref<1x1x256x128xbf16, #tpu.memory_space<vmem>>, vector<1x1x8x128xbf16>
    %14 = vector.shape_cast %13 : vector<1x1x8x128xbf16> to vector<8x128xbf16>
    %15 = arith.cmpf one, %14, %14 : vector<8x128xbf16>
    %cst_6 = arith.constant 0x7F800000 : f32
    %16 = arith.truncf %cst_6 : f32 to bf16
    %17 = vector.broadcast %16 : bf16 to vector<8x128xbf16>
    %18 = arith.select %15, %17, %14 : vector<8x128xi1>, vector<8x128xbf16>
    %19 = arith.cmpf ogt, %18, %11 : vector<8x128xbf16>
    %20 = arith.select %19, %18, %11 : vector<8x128xi1>, vector<8x128xbf16>
    %c1_i32_7 = arith.constant 1 : i32
    %21 = vector.broadcast %c1_i32_7 : i32 to vector<8x128xi32>
    %22 = arith.select %19, %21, %12 : vector<8x128xi1>, vector<8x128xi32>
    %c0_8 = arith.constant 0 : index
    %c0_9 = arith.constant 0 : index
    %c16 = arith.constant 16 : index
    %c0_10 = arith.constant 0 : index
    %23 = vector.load %arg3[%c0_8, %c0_9, %c16, %c0_10] : memref<1x1x256x128xbf16, #tpu.memory_space<vmem>>, vector<1x1x8x128xbf16>
    %24 = vector.shape_cast %23 : vector<1x1x8x128xbf16> to vector<8x128xbf16>
    %25 = arith.cmpf one, %24, %24 : vector<8x128xbf16>
    %cst_11 = arith.constant 0x7F800000 : f32
    %26 = arith.truncf %cst_11 : f32 to bf16
    %27 = vector.broadcast %26 : bf16 to vector<8x128xbf16>
    %28 = arith.select %25, %27, %24 : vector<8x128xi1>, vector<8x128xbf16>
    %29 = arith.cmpf ogt, %28, %20 : vector<8x128xbf16>
    %30 = arith.select %29, %28, %20 : vector<8x128xi1>, vector<8x128xbf16>
    %c2_i32 = arith.constant 2 : i32
    %31 = vector.broadcast %c2_i32 : i32 to vector<8x128xi32>
    %32 = arith.select %29, %31, %22 : vector<8x128xi1>, vector<8x128xi32>
    %c0_12 = arith.constant 0 : index
    %c0_13 = arith.constant 0 : index
    %c24 = arith.constant 24 : index
    %c0_14 = arith.constant 0 : index
    %33 = vector.load %arg3[%c0_12, %c0_13, %c24, %c0_14] : memref<1x1x256x128xbf16, #tpu.memory_space<vmem>>, vector<1x1x8x128xbf16>
    %34 = vector.shape_cast %33 : vector<1x1x8x128xbf16> to vector<8x128xbf16>
    %35 = arith.cmpf one, %34, %34 : vector<8x128xbf16>
    %cst_15 = arith.constant 0x7F800000 : f32
    %36 = arith.truncf %cst_15 : f32 to bf16
    %37 = vector.broadcast %36 : bf16 to vector<8x128xbf16>
    %38 = arith.select %35, %37, %34 : vector<8x128xi1>, vector<8x128xbf16>
    %39 = arith.cmpf ogt, %38, %30 : vector<8x128xbf16>
    %40 = arith.select %39, %38, %30 : vector<8x128xi1>, vector<8x128xbf16>
    %c3_i32 = arith.constant 3 : i32
    %41 = vector.broadcast %c3_i32 : i32 to vector<8x128xi32>
    %42 = arith.select %39, %41, %32 : vector<8x128xi1>, vector<8x128xi32>
    %c0_16 = arith.constant 0 : index
    %c0_17 = arith.constant 0 : index
    %c32 = arith.constant 32 : index
    %c0_18 = arith.constant 0 : index
    %43 = vector.load %arg3[%c0_16, %c0_17, %c32, %c0_18] : memref<1x1x256x128xbf16, #tpu.memory_space<vmem>>, vector<1x1x8x128xbf16>
    %44 = vector.shape_cast %43 : vector<1x1x8x128xbf16> to vector<8x128xbf16>
    %45 = arith.cmpf one, %44, %44 : vector<8x128xbf16>
    %cst_19 = arith.constant 0x7F800000 : f32
    %46 = arith.truncf %cst_19 : f32 to bf16
    %47 = vector.broadcast %46 : bf16 to vector<8x128xbf16>
    %48 = arith.select %45, %47, %44 : vector<8x128xi1>, vector<8x128xbf16>
    %49 = arith.cmpf ogt, %48, %40 : vector<8x128xbf16>
    %50 = arith.select %49, %48, %40 : vector<8x128xi1>, vector<8x128xbf16>
    %c4_i32 = arith.constant 4 : i32
    %51 = vector.broadcast %c4_i32 : i32 to vector<8x128xi32>
    %52 = arith.select %49, %51, %42 : vector<8x128xi1>, vector<8x128xi32>
    %c0_20 = arith.constant 0 : index
    %c0_21 = arith.constant 0 : index
    %c40 = arith.constant 40 : index
    %c0_22 = arith.constant 0 : index
    %53 = vector.load %arg3[%c0_20, %c0_21, %c40, %c0_22] : memref<1x1x256x128xbf16, #tpu.memory_space<vmem>>, vector<1x1x8x128xbf16>
    %54 = vector.shape_cast %53 : vector<1x1x8x128xbf16> to vector<8x128xbf16>
    %55 = arith.cmpf one, %54, %54 : vector<8x128xbf16>
    %cst_23 = arith.constant 0x7F800000 : f32
    %56 = arith.truncf %cst_23 : f32 to bf16
    %57 = vector.broadcast %56 : bf16 to vector<8x128xbf16>
    %58 = arith.select %55, %57, %54 : vector<8x128xi1>, vector<8x128xbf16>
    %59 = arith.cmpf ogt, %58, %50 : vector<8x128xbf16>
    %60 = arith.select %59, %58, %50 : vector<8x128xi1>, vector<8x128xbf16>
    %c5_i32 = arith.constant 5 : i32
    %61 = vector.broadcast %c5_i32 : i32 to vector<8x128xi32>
    %62 = arith.select %59, %61, %52 : vector<8x128xi1>, vector<8x128xi32>
    %c0_24 = arith.constant 0 : index
    %c0_25 = arith.constant 0 : index
    %c48 = arith.constant 48 : index
    %c0_26 = arith.constant 0 : index
    %63 = vector.load %arg3[%c0_24, %c0_25, %c48, %c0_26] : memref<1x1x256x128xbf16, #tpu.memory_space<vmem>>, vector<1x1x8x128xbf16>
    %64 = vector.shape_cast %63 : vector<1x1x8x128xbf16> to vector<8x128xbf16>
    %65 = arith.cmpf one, %64, %64 : vector<8x128xbf16>
    %cst_27 = arith.constant 0x7F800000 : f32
    %66 = arith.truncf %cst_27 : f32 to bf16
    %67 = vector.broadcast %66 : bf16 to vector<8x128xbf16>
    %68 = arith.select %65, %67, %64 : vector<8x128xi1>, vector<8x128xbf16>
    %69 = arith.cmpf ogt, %68, %60 : vector<8x128xbf16>
    %70 = arith.select %69, %68, %60 : vector<8x128xi1>, vector<8x128xbf16>
    %c6_i32 = arith.constant 6 : i32
    %71 = vector.broadcast %c6_i32 : i32 to vector<8x128xi32>
    %72 = arith.select %69, %71, %62 : vector<8x128xi1>, vector<8x128xi32>
    %c0_28 = arith.constant 0 : index
    %c0_29 = arith.constant 0 : index
    %c56 = arith.constant 56 : index
    %c0_30 = arith.constant 0 : index
    %73 = vector.load %arg3[%c0_28, %c0_29, %c56, %c0_30] : memref<1x1x256x128xbf16, #tpu.memory_space<vmem>>, vector<1x1x8x128xbf16>
    %74 = vector.shape_cast %73 : vector<1x1x8x128xbf16> to vector<8x128xbf16>
    %75 = arith.cmpf one, %74, %74 : vector<8x128xbf16>
    %cst_31 = arith.constant 0x7F800000 : f32
    %76 = arith.truncf %cst_31 : f32 to bf16
    %77 = vector.broadcast %76 : bf16 to vector<8x128xbf16>
    %78 = arith.select %75, %77, %74 : vector<8x128xi1>, vector<8x128xbf16>
    %79 = arith.cmpf ogt, %78, %70 : vector<8x128xbf16>
    %80 = arith.select %79, %78, %70 : vector<8x128xi1>, vector<8x128xbf16>
    %c7_i32 = arith.constant 7 : i32
    %81 = vector.broadcast %c7_i32 : i32 to vector<8x128xi32>
    %82 = arith.select %79, %81, %72 : vector<8x128xi1>, vector<8x128xi32>
    %c0_32 = arith.constant 0 : index
    %c0_33 = arith.constant 0 : index
    %c64 = arith.constant 64 : index
    %c0_34 = arith.constant 0 : index
    %83 = vector.load %arg3[%c0_32, %c0_33, %c64, %c0_34] : memref<1x1x256x128xbf16, #tpu.memory_space<vmem>>, vector<1x1x8x128xbf16>
    %84 = vector.shape_cast %83 : vector<1x1x8x128xbf16> to vector<8x128xbf16>
    %85 = arith.cmpf one, %84, %84 : vector<8x128xbf16>
    %cst_35 = arith.constant 0x7F800000 : f32
    %86 = arith.truncf %cst_35 : f32 to bf16
    %87 = vector.broadcast %86 : bf16 to vector<8x128xbf16>
    %88 = arith.select %85, %87, %84 : vector<8x128xi1>, vector<8x128xbf16>
    %89 = arith.cmpf ogt, %88, %80 : vector<8x128xbf16>
    %90 = arith.select %89, %88, %80 : vector<8x128xi1>, vector<8x128xbf16>
    %c8_i32 = arith.constant 8 : i32
    %91 = vector.broadcast %c8_i32 : i32 to vector<8x128xi32>
    %92 = arith.select %89, %91, %82 : vector<8x128xi1>, vector<8x128xi32>
    %c0_36 = arith.constant 0 : index
    %c0_37 = arith.constant 0 : index
    %c72 = arith.constant 72 : index
    %c0_38 = arith.constant 0 : index
    %93 = vector.load %arg3[%c0_36, %c0_37, %c72, %c0_38] : memref<1x1x256x128xbf16, #tpu.memory_space<vmem>>, vector<1x1x8x128xbf16>
    %94 = vector.shape_cast %93 : vector<1x1x8x128xbf16> to vector<8x128xbf16>
    %95 = arith.cmpf one, %94, %94 : vector<8x128xbf16>
    %cst_39 = arith.constant 0x7F800000 : f32
    %96 = arith.truncf %cst_39 : f32 to bf16
    %97 = vector.broadcast %96 : bf16 to vector<8x128xbf16>
    %98 = arith.select %95, %97, %94 : vector<8x128xi1>, vector<8x128xbf16>
    %99 = arith.cmpf ogt, %98, %90 : vector<8x128xbf16>
    %100 = arith.select %99, %98, %90 : vector<8x128xi1>, vector<8x128xbf16>
    %c9_i32 = arith.constant 9 : i32
    %101 = vector.broadcast %c9_i32 : i32 to vector<8x128xi32>
    %102 = arith.select %99, %101, %92 : vector<8x128xi1>, vector<8x128xi32>
    %c0_40 = arith.constant 0 : index
    %c0_41 = arith.constant 0 : index
    %c80 = arith.constant 80 : index
    %c0_42 = arith.constant 0 : index
    %103 = vector.load %arg3[%c0_40, %c0_41, %c80, %c0_42] : memref<1x1x256x128xbf16, #tpu.memory_space<vmem>>, vector<1x1x8x128xbf16>
    %104 = vector.shape_cast %103 : vector<1x1x8x128xbf16> to vector<8x128xbf16>
    %105 = arith.cmpf one, %104, %104 : vector<8x128xbf16>
    %cst_43 = arith.constant 0x7F800000 : f32
    %106 = arith.truncf %cst_43 : f32 to bf16
    %107 = vector.broadcast %106 : bf16 to vector<8x128xbf16>
    %108 = arith.select %105, %107, %104 : vector<8x128xi1>, vector<8x128xbf16>
    %109 = arith.cmpf ogt, %108, %100 : vector<8x128xbf16>
    %110 = arith.select %109, %108, %100 : vector<8x128xi1>, vector<8x128xbf16>
    %c10_i32 = arith.constant 10 : i32
    %111 = vector.broadcast %c10_i32 : i32 to vector<8x128xi32>
    %112 = arith.select %109, %111, %102 : vector<8x128xi1>, vector<8x128xi32>
    %c0_44 = arith.constant 0 : index
    %c0_45 = arith.constant 0 : index
    %c88 = arith.constant 88 : index
    %c0_46 = arith.constant 0 : index
    %113 = vector.load %arg3[%c0_44, %c0_45, %c88, %c0_46] : memref<1x1x256x128xbf16, #tpu.memory_space<vmem>>, vector<1x1x8x128xbf16>
    %114 = vector.shape_cast %113 : vector<1x1x8x128xbf16> to vector<8x128xbf16>
    %115 = arith.cmpf one, %114, %114 : vector<8x128xbf16>
    %cst_47 = arith.constant 0x7F800000 : f32
    %116 = arith.truncf %cst_47 : f32 to bf16
    %117 = vector.broadcast %116 : bf16 to vector<8x128xbf16>
    %118 = arith.select %115, %117, %114 : vector<8x128xi1>, vector<8x128xbf16>
    %119 = arith.cmpf ogt, %118, %110 : vector<8x128xbf16>
    %120 = arith.select %119, %118, %110 : vector<8x128xi1>, vector<8x128xbf16>
    %c11_i32 = arith.constant 11 : i32
    %121 = vector.broadcast %c11_i32 : i32 to vector<8x128xi32>
    %122 = arith.select %119, %121, %112 : vector<8x128xi1>, vector<8x128xi32>
    %c0_48 = arith.constant 0 : index
    %c0_49 = arith.constant 0 : index
    %c96 = arith.constant 96 : index
    %c0_50 = arith.constant 0 : index
    %123 = vector.load %arg3[%c0_48, %c0_49, %c96, %c0_50] : memref<1x1x256x128xbf16, #tpu.memory_space<vmem>>, vector<1x1x8x128xbf16>
    %124 = vector.shape_cast %123 : vector<1x1x8x128xbf16> to vector<8x128xbf16>
    %125 = arith.cmpf one, %124, %124 : vector<8x128xbf16>
    %cst_51 = arith.constant 0x7F800000 : f32
    %126 = arith.truncf %cst_51 : f32 to bf16
    %127 = vector.broadcast %126 : bf16 to vector<8x128xbf16>
    %128 = arith.select %125, %127, %124 : vector<8x128xi1>, vector<8x128xbf16>
    %129 = arith.cmpf ogt, %128, %120 : vector<8x128xbf16>
    %130 = arith.select %129, %128, %120 : vector<8x128xi1>, vector<8x128xbf16>
    %c12_i32 = arith.constant 12 : i32
    %131 = vector.broadcast %c12_i32 : i32 to vector<8x128xi32>
    %132 = arith.select %129, %131, %122 : vector<8x128xi1>, vector<8x128xi32>
    %c0_52 = arith.constant 0 : index
    %c0_53 = arith.constant 0 : index
    %c104 = arith.constant 104 : index
    %c0_54 = arith.constant 0 : index
    %133 = vector.load %arg3[%c0_52, %c0_53, %c104, %c0_54] : memref<1x1x256x128xbf16, #tpu.memory_space<vmem>>, vector<1x1x8x128xbf16>
    %134 = vector.shape_cast %133 : vector<1x1x8x128xbf16> to vector<8x128xbf16>
    %135 = arith.cmpf one, %134, %134 : vector<8x128xbf16>
    %cst_55 = arith.constant 0x7F800000 : f32
    %136 = arith.truncf %cst_55 : f32 to bf16
    %137 = vector.broadcast %136 : bf16 to vector<8x128xbf16>
    %138 = arith.select %135, %137, %134 : vector<8x128xi1>, vector<8x128xbf16>
    %139 = arith.cmpf ogt, %138, %130 : vector<8x128xbf16>
    %140 = arith.select %139, %138, %130 : vector<8x128xi1>, vector<8x128xbf16>
    %c13_i32 = arith.constant 13 : i32
    %141 = vector.broadcast %c13_i32 : i32 to vector<8x128xi32>
    %142 = arith.select %139, %141, %132 : vector<8x128xi1>, vector<8x128xi32>
    %c0_56 = arith.constant 0 : index
    %c0_57 = arith.constant 0 : index
    %c112 = arith.constant 112 : index
    %c0_58 = arith.constant 0 : index
    %143 = vector.load %arg3[%c0_56, %c0_57, %c112, %c0_58] : memref<1x1x256x128xbf16, #tpu.memory_space<vmem>>, vector<1x1x8x128xbf16>
    %144 = vector.shape_cast %143 : vector<1x1x8x128xbf16> to vector<8x128xbf16>
    %145 = arith.cmpf one, %144, %144 : vector<8x128xbf16>
    %cst_59 = arith.constant 0x7F800000 : f32
    %146 = arith.truncf %cst_59 : f32 to bf16
    %147 = vector.broadcast %146 : bf16 to vector<8x128xbf16>
    %148 = arith.select %145, %147, %144 : vector<8x128xi1>, vector<8x128xbf16>
    %149 = arith.cmpf ogt, %148, %140 : vector<8x128xbf16>
    %150 = arith.select %149, %148, %140 : vector<8x128xi1>, vector<8x128xbf16>
    %c14_i32 = arith.constant 14 : i32
    %151 = vector.broadcast %c14_i32 : i32 to vector<8x128xi32>
    %152 = arith.select %149, %151, %142 : vector<8x128xi1>, vector<8x128xi32>
    %c0_60 = arith.constant 0 : index
    %c0_61 = arith.constant 0 : index
    %c120 = arith.constant 120 : index
    %c0_62 = arith.constant 0 : index
    %153 = vector.load %arg3[%c0_60, %c0_61, %c120, %c0_62] : memref<1x1x256x128xbf16, #tpu.memory_space<vmem>>, vector<1x1x8x128xbf16>
    %154 = vector.shape_cast %153 : vector<1x1x8x128xbf16> to vector<8x128xbf16>
    %155 = arith.cmpf one, %154, %154 : vector<8x128xbf16>
    %cst_63 = arith.constant 0x7F800000 : f32
    %156 = arith.truncf %cst_63 : f32 to bf16
    %157 = vector.broadcast %156 : bf16 to vector<8x128xbf16>
    %158 = arith.select %155, %157, %154 : vector<8x128xi1>, vector<8x128xbf16>
    %159 = arith.cmpf ogt, %158, %150 : vector<8x128xbf16>
    %160 = arith.select %159, %158, %150 : vector<8x128xi1>, vector<8x128xbf16>
    %c15_i32 = arith.constant 15 : i32
    %161 = vector.broadcast %c15_i32 : i32 to vector<8x128xi32>
    %162 = arith.select %159, %161, %152 : vector<8x128xi1>, vector<8x128xi32>
    %c0_64 = arith.constant 0 : index
    %c0_65 = arith.constant 0 : index
    %c128 = arith.constant 128 : index
    %c0_66 = arith.constant 0 : index
    %163 = vector.load %arg3[%c0_64, %c0_65, %c128, %c0_66] : memref<1x1x256x128xbf16, #tpu.memory_space<vmem>>, vector<1x1x8x128xbf16>
    %164 = vector.shape_cast %163 : vector<1x1x8x128xbf16> to vector<8x128xbf16>
    %165 = arith.cmpf one, %164, %164 : vector<8x128xbf16>
    %cst_67 = arith.constant 0x7F800000 : f32
    %166 = arith.truncf %cst_67 : f32 to bf16
    %167 = vector.broadcast %166 : bf16 to vector<8x128xbf16>
    %168 = arith.select %165, %167, %164 : vector<8x128xi1>, vector<8x128xbf16>
    %169 = arith.cmpf ogt, %168, %160 : vector<8x128xbf16>
    %170 = arith.select %169, %168, %160 : vector<8x128xi1>, vector<8x128xbf16>
    %c16_i32 = arith.constant 16 : i32
    %171 = vector.broadcast %c16_i32 : i32 to vector<8x128xi32>
    %172 = arith.select %169, %171, %162 : vector<8x128xi1>, vector<8x128xi32>
    %c0_68 = arith.constant 0 : index
    %c0_69 = arith.constant 0 : index
    %c136 = arith.constant 136 : index
    %c0_70 = arith.constant 0 : index
    %173 = vector.load %arg3[%c0_68, %c0_69, %c136, %c0_70] : memref<1x1x256x128xbf16, #tpu.memory_space<vmem>>, vector<1x1x8x128xbf16>
    %174 = vector.shape_cast %173 : vector<1x1x8x128xbf16> to vector<8x128xbf16>
    %175 = arith.cmpf one, %174, %174 : vector<8x128xbf16>
    %cst_71 = arith.constant 0x7F800000 : f32
    %176 = arith.truncf %cst_71 : f32 to bf16
    %177 = vector.broadcast %176 : bf16 to vector<8x128xbf16>
    %178 = arith.select %175, %177, %174 : vector<8x128xi1>, vector<8x128xbf16>
    %179 = arith.cmpf ogt, %178, %170 : vector<8x128xbf16>
    %180 = arith.select %179, %178, %170 : vector<8x128xi1>, vector<8x128xbf16>
    %c17_i32 = arith.constant 17 : i32
    %181 = vector.broadcast %c17_i32 : i32 to vector<8x128xi32>
    %182 = arith.select %179, %181, %172 : vector<8x128xi1>, vector<8x128xi32>
    %c0_72 = arith.constant 0 : index
    %c0_73 = arith.constant 0 : index
    %c144 = arith.constant 144 : index
    %c0_74 = arith.constant 0 : index
    %183 = vector.load %arg3[%c0_72, %c0_73, %c144, %c0_74] : memref<1x1x256x128xbf16, #tpu.memory_space<vmem>>, vector<1x1x8x128xbf16>
    %184 = vector.shape_cast %183 : vector<1x1x8x128xbf16> to vector<8x128xbf16>
    %185 = arith.cmpf one, %184, %184 : vector<8x128xbf16>
    %cst_75 = arith.constant 0x7F800000 : f32
    %186 = arith.truncf %cst_75 : f32 to bf16
    %187 = vector.broadcast %186 : bf16 to vector<8x128xbf16>
    %188 = arith.select %185, %187, %184 : vector<8x128xi1>, vector<8x128xbf16>
    %189 = arith.cmpf ogt, %188, %180 : vector<8x128xbf16>
    %190 = arith.select %189, %188, %180 : vector<8x128xi1>, vector<8x128xbf16>
    %c18_i32 = arith.constant 18 : i32
    %191 = vector.broadcast %c18_i32 : i32 to vector<8x128xi32>
    %192 = arith.select %189, %191, %182 : vector<8x128xi1>, vector<8x128xi32>
    %c0_76 = arith.constant 0 : index
    %c0_77 = arith.constant 0 : index
    %c152 = arith.constant 152 : index
    %c0_78 = arith.constant 0 : index
    %193 = vector.load %arg3[%c0_76, %c0_77, %c152, %c0_78] : memref<1x1x256x128xbf16, #tpu.memory_space<vmem>>, vector<1x1x8x128xbf16>
    %194 = vector.shape_cast %193 : vector<1x1x8x128xbf16> to vector<8x128xbf16>
    %195 = arith.cmpf one, %194, %194 : vector<8x128xbf16>
    %cst_79 = arith.constant 0x7F800000 : f32
    %196 = arith.truncf %cst_79 : f32 to bf16
    %197 = vector.broadcast %196 : bf16 to vector<8x128xbf16>
    %198 = arith.select %195, %197, %194 : vector<8x128xi1>, vector<8x128xbf16>
    %199 = arith.cmpf ogt, %198, %190 : vector<8x128xbf16>
    %200 = arith.select %199, %198, %190 : vector<8x128xi1>, vector<8x128xbf16>
    %c19_i32 = arith.constant 19 : i32
    %201 = vector.broadcast %c19_i32 : i32 to vector<8x128xi32>
    %202 = arith.select %199, %201, %192 : vector<8x128xi1>, vector<8x128xi32>
    %c0_80 = arith.constant 0 : index
    %c0_81 = arith.constant 0 : index
    %c160 = arith.constant 160 : index
    %c0_82 = arith.constant 0 : index
    %203 = vector.load %arg3[%c0_80, %c0_81, %c160, %c0_82] : memref<1x1x256x128xbf16, #tpu.memory_space<vmem>>, vector<1x1x8x128xbf16>
    %204 = vector.shape_cast %203 : vector<1x1x8x128xbf16> to vector<8x128xbf16>
    %205 = arith.cmpf one, %204, %204 : vector<8x128xbf16>
    %cst_83 = arith.constant 0x7F800000 : f32
    %206 = arith.truncf %cst_83 : f32 to bf16
    %207 = vector.broadcast %206 : bf16 to vector<8x128xbf16>
    %208 = arith.select %205, %207, %204 : vector<8x128xi1>, vector<8x128xbf16>
    %209 = arith.cmpf ogt, %208, %200 : vector<8x128xbf16>
    %210 = arith.select %209, %208, %200 : vector<8x128xi1>, vector<8x128xbf16>
    %c20_i32 = arith.constant 20 : i32
    %211 = vector.broadcast %c20_i32 : i32 to vector<8x128xi32>
    %212 = arith.select %209, %211, %202 : vector<8x128xi1>, vector<8x128xi32>
    %c0_84 = arith.constant 0 : index
    %c0_85 = arith.constant 0 : index
    %c168 = arith.constant 168 : index
    %c0_86 = arith.constant 0 : index
    %213 = vector.load %arg3[%c0_84, %c0_85, %c168, %c0_86] : memref<1x1x256x128xbf16, #tpu.memory_space<vmem>>, vector<1x1x8x128xbf16>
    %214 = vector.shape_cast %213 : vector<1x1x8x128xbf16> to vector<8x128xbf16>
    %215 = arith.cmpf one, %214, %214 : vector<8x128xbf16>
    %cst_87 = arith.constant 0x7F800000 : f32
    %216 = arith.truncf %cst_87 : f32 to bf16
    %217 = vector.broadcast %216 : bf16 to vector<8x128xbf16>
    %218 = arith.select %215, %217, %214 : vector<8x128xi1>, vector<8x128xbf16>
    %219 = arith.cmpf ogt, %218, %210 : vector<8x128xbf16>
    %220 = arith.select %219, %218, %210 : vector<8x128xi1>, vector<8x128xbf16>
    %c21_i32 = arith.constant 21 : i32
    %221 = vector.broadcast %c21_i32 : i32 to vector<8x128xi32>
    %222 = arith.select %219, %221, %212 : vector<8x128xi1>, vector<8x128xi32>
    %c0_88 = arith.constant 0 : index
    %c0_89 = arith.constant 0 : index
    %c176 = arith.constant 176 : index
    %c0_90 = arith.constant 0 : index
    %223 = vector.load %arg3[%c0_88, %c0_89, %c176, %c0_90] : memref<1x1x256x128xbf16, #tpu.memory_space<vmem>>, vector<1x1x8x128xbf16>
    %224 = vector.shape_cast %223 : vector<1x1x8x128xbf16> to vector<8x128xbf16>
    %225 = arith.cmpf one, %224, %224 : vector<8x128xbf16>
    %cst_91 = arith.constant 0x7F800000 : f32
    %226 = arith.truncf %cst_91 : f32 to bf16
    %227 = vector.broadcast %226 : bf16 to vector<8x128xbf16>
    %228 = arith.select %225, %227, %224 : vector<8x128xi1>, vector<8x128xbf16>
    %229 = arith.cmpf ogt, %228, %220 : vector<8x128xbf16>
    %230 = arith.select %229, %228, %220 : vector<8x128xi1>, vector<8x128xbf16>
    %c22_i32 = arith.constant 22 : i32
    %231 = vector.broadcast %c22_i32 : i32 to vector<8x128xi32>
    %232 = arith.select %229, %231, %222 : vector<8x128xi1>, vector<8x128xi32>
    %c0_92 = arith.constant 0 : index
    %c0_93 = arith.constant 0 : index
    %c184 = arith.constant 184 : index
    %c0_94 = arith.constant 0 : index
    %233 = vector.load %arg3[%c0_92, %c0_93, %c184, %c0_94] : memref<1x1x256x128xbf16, #tpu.memory_space<vmem>>, vector<1x1x8x128xbf16>
    %234 = vector.shape_cast %233 : vector<1x1x8x128xbf16> to vector<8x128xbf16>
    %235 = arith.cmpf one, %234, %234 : vector<8x128xbf16>
    %cst_95 = arith.constant 0x7F800000 : f32
    %236 = arith.truncf %cst_95 : f32 to bf16
    %237 = vector.broadcast %236 : bf16 to vector<8x128xbf16>
    %238 = arith.select %235, %237, %234 : vector<8x128xi1>, vector<8x128xbf16>
    %239 = arith.cmpf ogt, %238, %230 : vector<8x128xbf16>
    %240 = arith.select %239, %238, %230 : vector<8x128xi1>, vector<8x128xbf16>
    %c23_i32 = arith.constant 23 : i32
    %241 = vector.broadcast %c23_i32 : i32 to vector<8x128xi32>
    %242 = arith.select %239, %241, %232 : vector<8x128xi1>, vector<8x128xi32>
    %c0_96 = arith.constant 0 : index
    %c0_97 = arith.constant 0 : index
    %c192 = arith.constant 192 : index
    %c0_98 = arith.constant 0 : index
    %243 = vector.load %arg3[%c0_96, %c0_97, %c192, %c0_98] : memref<1x1x256x128xbf16, #tpu.memory_space<vmem>>, vector<1x1x8x128xbf16>
    %244 = vector.shape_cast %243 : vector<1x1x8x128xbf16> to vector<8x128xbf16>
    %245 = arith.cmpf one, %244, %244 : vector<8x128xbf16>
    %cst_99 = arith.constant 0x7F800000 : f32
    %246 = arith.truncf %cst_99 : f32 to bf16
    %247 = vector.broadcast %246 : bf16 to vector<8x128xbf16>
    %248 = arith.select %245, %247, %244 : vector<8x128xi1>, vector<8x128xbf16>
    %249 = arith.cmpf ogt, %248, %240 : vector<8x128xbf16>
    %250 = arith.select %249, %248, %240 : vector<8x128xi1>, vector<8x128xbf16>
    %c24_i32 = arith.constant 24 : i32
    %251 = vector.broadcast %c24_i32 : i32 to vector<8x128xi32>
    %252 = arith.select %249, %251, %242 : vector<8x128xi1>, vector<8x128xi32>
    %c0_100 = arith.constant 0 : index
    %c0_101 = arith.constant 0 : index
    %c200 = arith.constant 200 : index
    %c0_102 = arith.constant 0 : index
    %253 = vector.load %arg3[%c0_100, %c0_101, %c200, %c0_102] : memref<1x1x256x128xbf16, #tpu.memory_space<vmem>>, vector<1x1x8x128xbf16>
    %254 = vector.shape_cast %253 : vector<1x1x8x128xbf16> to vector<8x128xbf16>
    %255 = arith.cmpf one, %254, %254 : vector<8x128xbf16>
    %cst_103 = arith.constant 0x7F800000 : f32
    %256 = arith.truncf %cst_103 : f32 to bf16
    %257 = vector.broadcast %256 : bf16 to vector<8x128xbf16>
    %258 = arith.select %255, %257, %254 : vector<8x128xi1>, vector<8x128xbf16>
    %259 = arith.cmpf ogt, %258, %250 : vector<8x128xbf16>
    %260 = arith.select %259, %258, %250 : vector<8x128xi1>, vector<8x128xbf16>
    %c25_i32 = arith.constant 25 : i32
    %261 = vector.broadcast %c25_i32 : i32 to vector<8x128xi32>
    %262 = arith.select %259, %261, %252 : vector<8x128xi1>, vector<8x128xi32>
    %c0_104 = arith.constant 0 : index
    %c0_105 = arith.constant 0 : index
    %c208 = arith.constant 208 : index
    %c0_106 = arith.constant 0 : index
    %263 = vector.load %arg3[%c0_104, %c0_105, %c208, %c0_106] : memref<1x1x256x128xbf16, #tpu.memory_space<vmem>>, vector<1x1x8x128xbf16>
    %264 = vector.shape_cast %263 : vector<1x1x8x128xbf16> to vector<8x128xbf16>
    %265 = arith.cmpf one, %264, %264 : vector<8x128xbf16>
    %cst_107 = arith.constant 0x7F800000 : f32
    %266 = arith.truncf %cst_107 : f32 to bf16
    %267 = vector.broadcast %266 : bf16 to vector<8x128xbf16>
    %268 = arith.select %265, %267, %264 : vector<8x128xi1>, vector<8x128xbf16>
    %269 = arith.cmpf ogt, %268, %260 : vector<8x128xbf16>
    %270 = arith.select %269, %268, %260 : vector<8x128xi1>, vector<8x128xbf16>
    %c26_i32 = arith.constant 26 : i32
    %271 = vector.broadcast %c26_i32 : i32 to vector<8x128xi32>
    %272 = arith.select %269, %271, %262 : vector<8x128xi1>, vector<8x128xi32>
    %c0_108 = arith.constant 0 : index
    %c0_109 = arith.constant 0 : index
    %c216 = arith.constant 216 : index
    %c0_110 = arith.constant 0 : index
    %273 = vector.load %arg3[%c0_108, %c0_109, %c216, %c0_110] : memref<1x1x256x128xbf16, #tpu.memory_space<vmem>>, vector<1x1x8x128xbf16>
    %274 = vector.shape_cast %273 : vector<1x1x8x128xbf16> to vector<8x128xbf16>
    %275 = arith.cmpf one, %274, %274 : vector<8x128xbf16>
    %cst_111 = arith.constant 0x7F800000 : f32
    %276 = arith.truncf %cst_111 : f32 to bf16
    %277 = vector.broadcast %276 : bf16 to vector<8x128xbf16>
    %278 = arith.select %275, %277, %274 : vector<8x128xi1>, vector<8x128xbf16>
    %279 = arith.cmpf ogt, %278, %270 : vector<8x128xbf16>
    %280 = arith.select %279, %278, %270 : vector<8x128xi1>, vector<8x128xbf16>
    %c27_i32 = arith.constant 27 : i32
    %281 = vector.broadcast %c27_i32 : i32 to vector<8x128xi32>
    %282 = arith.select %279, %281, %272 : vector<8x128xi1>, vector<8x128xi32>
    %c0_112 = arith.constant 0 : index
    %c0_113 = arith.constant 0 : index
    %c224 = arith.constant 224 : index
    %c0_114 = arith.constant 0 : index
    %283 = vector.load %arg3[%c0_112, %c0_113, %c224, %c0_114] : memref<1x1x256x128xbf16, #tpu.memory_space<vmem>>, vector<1x1x8x128xbf16>
    %284 = vector.shape_cast %283 : vector<1x1x8x128xbf16> to vector<8x128xbf16>
    %285 = arith.cmpf one, %284, %284 : vector<8x128xbf16>
    %cst_115 = arith.constant 0x7F800000 : f32
    %286 = arith.truncf %cst_115 : f32 to bf16
    %287 = vector.broadcast %286 : bf16 to vector<8x128xbf16>
    %288 = arith.select %285, %287, %284 : vector<8x128xi1>, vector<8x128xbf16>
    %289 = arith.cmpf ogt, %288, %280 : vector<8x128xbf16>
    %290 = arith.select %289, %288, %280 : vector<8x128xi1>, vector<8x128xbf16>
    %c28_i32 = arith.constant 28 : i32
    %291 = vector.broadcast %c28_i32 : i32 to vector<8x128xi32>
    %292 = arith.select %289, %291, %282 : vector<8x128xi1>, vector<8x128xi32>
    %c0_116 = arith.constant 0 : index
    %c0_117 = arith.constant 0 : index
    %c232 = arith.constant 232 : index
    %c0_118 = arith.constant 0 : index
    %293 = vector.load %arg3[%c0_116, %c0_117, %c232, %c0_118] : memref<1x1x256x128xbf16, #tpu.memory_space<vmem>>, vector<1x1x8x128xbf16>
    %294 = vector.shape_cast %293 : vector<1x1x8x128xbf16> to vector<8x128xbf16>
    %295 = arith.cmpf one, %294, %294 : vector<8x128xbf16>
    %cst_119 = arith.constant 0x7F800000 : f32
    %296 = arith.truncf %cst_119 : f32 to bf16
    %297 = vector.broadcast %296 : bf16 to vector<8x128xbf16>
    %298 = arith.select %295, %297, %294 : vector<8x128xi1>, vector<8x128xbf16>
    %299 = arith.cmpf ogt, %298, %290 : vector<8x128xbf16>
    %300 = arith.select %299, %298, %290 : vector<8x128xi1>, vector<8x128xbf16>
    %c29_i32 = arith.constant 29 : i32
    %301 = vector.broadcast %c29_i32 : i32 to vector<8x128xi32>
    %302 = arith.select %299, %301, %292 : vector<8x128xi1>, vector<8x128xi32>
    %c0_120 = arith.constant 0 : index
    %c0_121 = arith.constant 0 : index
    %c240 = arith.constant 240 : index
    %c0_122 = arith.constant 0 : index
    %303 = vector.load %arg3[%c0_120, %c0_121, %c240, %c0_122] : memref<1x1x256x128xbf16, #tpu.memory_space<vmem>>, vector<1x1x8x128xbf16>
    %304 = vector.shape_cast %303 : vector<1x1x8x128xbf16> to vector<8x128xbf16>
    %305 = arith.cmpf one, %304, %304 : vector<8x128xbf16>
    %cst_123 = arith.constant 0x7F800000 : f32
    %306 = arith.truncf %cst_123 : f32 to bf16
    %307 = vector.broadcast %306 : bf16 to vector<8x128xbf16>
    %308 = arith.select %305, %307, %304 : vector<8x128xi1>, vector<8x128xbf16>
    %309 = arith.cmpf ogt, %308, %300 : vector<8x128xbf16>
    %310 = arith.select %309, %308, %300 : vector<8x128xi1>, vector<8x128xbf16>
    %c30_i32 = arith.constant 30 : i32
    %311 = vector.broadcast %c30_i32 : i32 to vector<8x128xi32>
    %312 = arith.select %309, %311, %302 : vector<8x128xi1>, vector<8x128xi32>
    %c0_124 = arith.constant 0 : index
    %c0_125 = arith.constant 0 : index
    %c248 = arith.constant 248 : index
    %c0_126 = arith.constant 0 : index
    %313 = vector.load %arg3[%c0_124, %c0_125, %c248, %c0_126] : memref<1x1x256x128xbf16, #tpu.memory_space<vmem>>, vector<1x1x8x128xbf16>
    %314 = vector.shape_cast %313 : vector<1x1x8x128xbf16> to vector<8x128xbf16>
    %315 = arith.cmpf one, %314, %314 : vector<8x128xbf16>
    %cst_127 = arith.constant 0x7F800000 : f32
    %316 = arith.truncf %cst_127 : f32 to bf16
    %317 = vector.broadcast %316 : bf16 to vector<8x128xbf16>
    %318 = arith.select %315, %317, %314 : vector<8x128xi1>, vector<8x128xbf16>
    %319 = arith.cmpf ogt, %318, %310 : vector<8x128xbf16>
    %c31_i32 = arith.constant 31 : i32
    %320 = vector.broadcast %c31_i32 : i32 to vector<8x128xi32>
    %321 = arith.select %319, %320, %312 : vector<8x128xi1>, vector<8x128xi32>
    %c1_i32_128 = arith.constant 1 : i32
    %322 = tpu.dynamic_rotate %321 by %c1_i32_128 dim 1 : vector<8x128xi32>, i32 -> vector<8x128xi32>
    %c1_i32_129 = arith.constant 1 : i32
    %323 = tpu.dynamic_rotate %321 by %c1_i32_129 dim 0 : vector<8x128xi32>, i32 -> vector<8x128xi32>
    %324 = vector.extract_strided_slice %323 {offsets = [0, 127], sizes = [8, 1], strides = [1, 1]} : vector<8x128xi32> to vector<8x1xi32>
    %c0_i32_130 = arith.constant 0 : i32
    %325 = vector.broadcast %c0_i32_130 : i32 to vector<8x1xi32>
    %326 = arith.cmpi eq, %4, %325 : vector<8x1xi32>
    %327 = vector.broadcast %3 : i32 to vector<8x1xi32>
    %328 = arith.select %326, %327, %324 : vector<8x1xi1>, vector<8x1xi32>
    %c0_i32_131 = arith.constant 0 : i32
    %329 = vector.broadcast %c0_i32_131 : i32 to vector<8x128xi32>
    %330 = arith.cmpi eq, %5, %329 : vector<8x128xi32>
    %331 = vector.shape_cast %328 : vector<8x1xi32> to vector<8x1xi32>
    %332 = vector.broadcast %331 : vector<8x1xi32> to vector<8x128xi32>
    %333 = arith.select %330, %332, %322 : vector<8x128xi1>, vector<8x128xi32>
    %c0_i32_132 = arith.constant 0 : i32
    %334 = vector.broadcast %c0_i32_132 : i32 to vector<8x128xi32>
    %335 = arith.cmpi ne, %321, %334 : vector<8x128xi32>
    %336 = arith.cmpi ne, %321, %333 : vector<8x128xi32>
    %337 = arith.andi %335, %336 : vector<8x128xi1>
    %338 = arith.extui %337 : vector<8x128xi1> to vector<8x128xi32>
    %c65536_i32 = arith.constant 65536 : i32
    %339 = vector.broadcast %c65536_i32 : i32 to vector<8x128xi32>
    %340 = arith.muli %338, %339 : vector<8x128xi32>
    %341 = arith.addi %321, %340 : vector<8x128xi32>
    %c0_133 = arith.constant 0 : index
    %c0_134 = arith.constant 0 : index
    %c0_135 = arith.constant 0 : index
    %c0_136 = arith.constant 0 : index
    %342 = vector.load %arg4[%c0_133, %c0_134, %c0_135, %c0_136] : memref<1x1x8x128xi32, #tpu.memory_space<vmem>>, vector<1x1x8x128xi32>
    %343 = vector.shape_cast %342 : vector<1x1x8x128xi32> to vector<8x128xi32>
    %344 = vector.shape_cast %341 : vector<8x128xi32> to vector<1x1x8x128xi32>
    tpu.vector_store %arg4[%c0_133, %c0_134, %c0_135, %c0_136], %344 {strides = array<i32>} : memref<1x1x8x128xi32, #tpu.memory_space<vmem>>, vector<1x1x8x128xi32>,
    return
  }
  func.func @transform_0(%arg0: i32, %arg1: i32, %arg2: memref<1xi32, #tpu.memory_space<smem>>) -> (i32, i32, i32, i32) {
    %c0_i32 = arith.constant 0 : i32
    %c0_i32_0 = arith.constant 0 : i32
    %c0_i32_1 = arith.constant 0 : i32
    return %arg0, %arg1, %c0_i32, %c0_i32_0 : i32, i32, i32, i32
  }
  func.func @transform_1(%arg0: i32, %arg1: i32, %arg2: memref<1xi32, #tpu.memory_space<smem>>) -> (i32, i32, i32, i32) {
    %c0_i32 = arith.constant 0 : i32
    %c0_i32_0 = arith.constant 0 : i32
    %c0_i32_1 = arith.constant 0 : i32
    return %arg0, %arg1, %c0_i32, %c0_i32_0 : i32, i32, i32, i32
  }
}

</mosaic_0001>

<bundles_post_ra>
// kernel: _greedy_ctc_forward_batched.1
= control target key start
LH: loop header
LB: loop body
LE: loop exit
PB: predicated region body
PF: predicated region fallthrough
CT: control target
= control target key end

     0   :  { %v387_v19 = vmov 0   ;;  %s706_s1 = inlined_call_operand.vmem [shape: bf16[1,1,256,128], index: 1, kind: input, shape index: {}]   ;;  %s707_s0 = inlined_call_operand.<no memory space> [shape: s32[1], index: 0, kind: input, shape index: {}]   ;;  %s708_s2 = inlined_call_operand.vmem [shape: s32[1,1,8,128], index: 2, kind: output, shape index: {}]  }
   0x1   :  { %v17_v0 = vld [vmem:[%s706_s1] sm:$0xf]  ;;  %v22_v1 = vld [vmem:[%s706_s1 + $0x4] sm:$0xf]  ;;  %v33_v2 = vld [vmem:[%s706_s1 + $0x8] sm:$0xf] }
   0x2   :  { %v18_v3 = vunpack.c.l.bf16 %v17_v0  ;;  %v23_v4 = vunpack.c.l.bf16 %v22_v1  ;;  %v34_v5 = vunpack.c.l.bf16 %v33_v2  ;;  %v44_v6 = vld [vmem:[%s706_s1 + $0xc] sm:$0xf]  ;;  %v55_v8 = vld [vmem:[%s706_s1 + $0x10] sm:$0xf]  ;;  %v66_v15 = vld [vmem:[%s706_s1 + $0x14] sm:$0xf] }
   0x3   :  { %v45_v7 = vunpack.c.l.bf16 %v44_v6  ;;  %v56_v14 = vunpack.c.l.bf16 %v55_v8  ;;  %v67_v23 = vunpack.c.l.bf16 %v66_v15  ;;  %v77_v25 = vld [vmem:[%s706_s1 + $0x18] sm:$0xf]  ;;  %v88_v32 = vld [vmem:[%s706_s1 + $0x1c] sm:$0xf]  ;;  %v99_v40 = vld [vmem:[%s706_s1 + $0x20] sm:$0xf] }
   0x4   :  { %vm19_vm0 = vcmp.ne.f32.partialorder %v18_v3, %v18_v3  ;;  %vm24_vm1 = vcmp.ne.f32.partialorder %v23_v4, %v23_v4  ;;  %vm35_vm2 = vcmp.ne.f32.partialorder %v34_v5, %v34_v5  ;;  %v78_v31 = vunpack.c.l.bf16 %v77_v25  ;;  %v110_v47 = vld [vmem:[%s706_s1 + $0x24] sm:$0xf]  ;;  %v121_v55 = vld [vmem:[%s706_s1 + $0x28] sm:$0xf]  ;;  %v132_v62 = vld [vmem:[%s706_s1 + $0x2c] sm:$0xf] }
   0x5   :  { %vm20_vm3 = vmpackc.low %vm19_vm0, %vm19_vm0  ;;  %vm46_vm6 = vcmp.ne.f32.partialorder %v45_v7, %v45_v7  ;;  %vm423_vm10 = vcmp.ne.f32.partialorder %v56_v14, %v56_v14  ;;  %vm68_vm14 = vcmp.ne.f32.partialorder %v67_v23, %v67_v23  ;;  %v89_v38 = vunpack.c.l.bf16 %v88_v32 }
   0x6   :  { %v21_v9 = vsel %vm20_vm3, 2139127680, %v17_v0  ;;  %vm25_vm4 = vmpackc.low %vm24_vm1, %vm24_vm1  ;;  %v100_v46 = vunpack.c.l.bf16 %v99_v40  ;;  %v111_v53 = vunpack.c.l.bf16 %v110_v47  ;;  %v122_v61 = vunpack.c.l.bf16 %v121_v55 }
   0x7   :  { %v26_v10 = vsel %vm25_vm4, 2139127680, %v22_v1  ;;  %v28_v11 = vunpack.c.l.bf16 %v21_v9  ;;  %vm36_vm5 = vmpackc.low %vm35_vm2, %vm35_vm2  ;;  %vm79_vm2 = vcmp.ne.f32.partialorder %v78_v31, %v78_v31  ;;  %v133_v4 = vunpack.c.l.bf16 %v132_v62 }
   0x8   :  { %v27_v12 = vunpack.c.l.bf16 %v26_v10  ;;  %v37_v13 = vsel %vm36_vm5, 2139127680, %v33_v2  ;;  %vm47_vm8 = vmpackc.low %vm46_vm6, %vm46_vm6  ;;  %vm90_vm6 = vcmp.ne.f32.partialorder %v89_v38, %v89_v38 }
   0x9   :  { %v38_v16 = vunpack.c.l.bf16 %v37_v13  ;;  %v48_v22 = vsel %vm47_vm8, 2139127680, %v44_v6  ;;  %vm58_vm12 = vmpackc.low %vm423_vm10, %vm423_vm10  ;;  %vm101_vm10 = vcmp.ne.f32.partialorder %v100_v46, %v100_v46  ;;  %v143_v6 = vld [vmem:[%s706_s1 + $0x30] sm:$0xf] }
   0xa   :  { %vm29_vm7 = vcmp.gt.f32.partialorder %v27_v12, %v28_v11  ;;  %v49_v27 = vunpack.c.l.bf16 %v48_v22  ;;  %v59_v30 = vsel %vm58_vm12, 2139127680, %v55_v8  ;;  %vm69_vm0 = vmpackc.low %vm68_vm14, %vm68_vm14  ;;  %vm112_vm14 = vcmp.ne.f32.partialorder %v111_v53, %v111_v53 }
   0xb   :  { %vm30_vm9 = vmpackc.low %vm29_vm7, %vm29_vm7  ;;  %v32_v20 = vsel %vm29_vm7, 1, %v387_v19  ;;  %v60_v34 = vunpack.c.l.bf16 %v59_v30  ;;  %v70_v37 = vsel %vm69_vm0, 2139127680, %v66_v15  ;;  %v144_v12 = vunpack.c.l.bf16 %v143_v6 }
   0xc   :  { %v31_v17 = vsel %vm30_vm9, %v26_v10, %v21_v9  ;;  %vm80_vm4 = vmpackc.low %vm79_vm2, %vm79_vm2  ;;  %v71_v42 = vunpack.c.l.bf16 %v70_v37  ;;  %vm123_vm2 = vcmp.ne.f32.partialorder %v122_v61, %v122_v61 }
   0xd   :  { %v39_v21 = vunpack.c.l.bf16 %v31_v17  ;;  %v81_v45 = vsel %vm80_vm4, 2139127680, %v77_v25  ;;  %vm91_vm8 = vmpackc.low %vm90_vm6, %vm90_vm6  ;;  %vm134_vm6 = vcmp.ne.f32.partialorder %v133_v4, %v133_v4 }
   0xe   :  { %v82_v49 = vunpack.c.l.bf16 %v81_v45  ;;  %v92_v52 = vsel %vm91_vm8, 2139127680, %v88_v32  ;;  %vm102_vm12 = vmpackc.low %vm101_vm10, %vm101_vm10  ;;  %vm145_vm10 = vcmp.ne.f32.partialorder %v144_v12, %v144_v12 }
   0xf   :  { %vm428_vm11 = vcmp.gt.f32.partialorder %v38_v16, %v39_v21  ;;  %v93_v57 = vunpack.c.l.bf16 %v92_v52  ;;  %v103_v60 = vsel %vm102_vm12, 2139127680, %v99_v40  ;;  %vm113_vm0 = vmpackc.low %vm112_vm14, %vm112_vm14 }
  0x10   :  { %vm41_vm13 = vmpackc.low %vm428_vm11, %vm428_vm11  ;;  %v43_v26 = vsel %vm428_vm11, 2, %v32_v20  ;;  %v104_v0 = vunpack.c.l.bf16 %v103_v60  ;;  %v114_v3 = vsel %vm113_vm0, 2139127680, %v110_v47 }
  0x11   :  { %v42_v28 = vsel %vm41_vm13, %v37_v13, %v31_v17  ;;  %vm124_vm4 = vmpackc.low %vm123_vm2, %vm123_vm2  ;;  %v115_v8 = vunpack.c.l.bf16 %v114_v3  ;;  %v154_v13 = vld [vmem:[%s706_s1 + $0x34] sm:$0xf] }
  0x12   :  { %v50_v29 = vunpack.c.l.bf16 %v42_v28  ;;  %v125_v11 = vsel %vm124_vm4, 2139127680, %v121_v55  ;;  %vm135_vm8 = vmpackc.low %vm134_vm6, %vm134_vm6  ;;  %v155_v20 = vunpack.c.l.bf16 %v154_v13 }
  0x13   :  { %v126_v15 = vunpack.c.l.bf16 %v125_v11  ;;  %v136_v18 = vsel %vm135_vm8, 2139127680, %v132_v62  ;;  %vm146_vm12 = vmpackc.low %vm145_vm10, %vm145_vm10 }
  0x14   :  { %vm51_vm15 = vcmp.gt.f32.partialorder %v49_v27, %v50_v29  ;;  %v137_v24 = vunpack.c.l.bf16 %v136_v18  ;;  %vm156_vm14 = vcmp.ne.f32.partialorder %v155_v20, %v155_v20  ;;  %v147_v27 = vsel %vm146_vm12, 2139127680, %v143_v6  ;;  %v176_v29 = vld [vmem:[%s706_s1 + $0x3c] sm:$0xf] }
  0x15   :  { %vm52_vm1 = vmpackc.low %vm51_vm15, %vm51_vm15  ;;  %v54_v33 = vsel %vm51_vm15, 3, %v43_v26  ;;  %v148_v31 = vunpack.c.l.bf16 %v147_v27 }
  0x16   :  { %v53_v35 = vsel %vm52_vm1, %v48_v22, %v42_v28  ;;  %v165_v22 = vld [vmem:[%s706_s1 + $0x38] sm:$0xf]  ;;  %vm157_vm0 = vmpackc.low %vm156_vm14, %vm156_vm14 }
  0x17   :  { %v61_v36 = vunpack.c.l.bf16 %v53_v35  ;;  %v166_v28 = vunpack.c.l.bf16 %v165_v22 }
  0x19   :  { %vm446_vm3 = vcmp.gt.f32.partialorder %v60_v34, %v61_v36  ;;  %vm167_vm2 = vcmp.ne.f32.partialorder %v166_v28, %v166_v28  ;;  %v158_v34 = vsel %vm157_vm0, 2139127680, %v154_v13 }
  0x1a   :  { %vm63_vm5 = vmpackc.low %vm446_vm3, %vm446_vm3  ;;  %v65_v41 = vsel %vm446_vm3, 4, %v54_v33  ;;  %v159_v39 = vunpack.c.l.bf16 %v158_v34 }
  0x1b   :  { %v64_v43 = vsel %vm63_vm5, %v59_v30, %v53_v35  ;;  %v177_v35 = vunpack.c.l.bf16 %v176_v29  ;;  %vm168_vm4 = vmpackc.low %vm167_vm2, %vm167_vm2 }
  0x1c   :  { %v72_v44 = vunpack.c.l.bf16 %v64_v43 }
  0x1d   :  { %vm178_vm6 = vcmp.ne.f32.partialorder %v177_v35, %v177_v35 }
  0x1e   :  { %vm73_vm7 = vcmp.gt.f32.partialorder %v71_v42, %v72_v44  ;;  %v169_v42 = vsel %vm168_vm4, 2139127680, %v165_v22  ;;  %vm179_vm8 = vmpackc.low %vm178_vm6, %vm178_vm6  ;;  %v198_v44 = vld [vmem:[%s706_s1 + $0x44] sm:$0xf] }
  0x1f   :  { %vm74_vm9 = vmpackc.low %vm73_vm7, %vm73_vm7  ;;  %v76_v48 = vsel %vm73_vm7, 5, %v65_v41  ;;  %v170_v46 = vunpack.c.l.bf16 %v169_v42 }
  0x20   :  { %v75_v50 = vsel %vm74_vm9, %v70_v37, %v64_v43  ;;  %v187_v37 = vld [vmem:[%s706_s1 + $0x40] sm:$0xf] }
  0x21   :  { %v83_v51 = vunpack.c.l.bf16 %v75_v50  ;;  %v188_v43 = vunpack.c.l.bf16 %v187_v37 }
  0x23   :  { %vm461_vm11 = vcmp.gt.f32.partialorder %v82_v49, %v83_v51  ;;  %vm189_vm10 = vcmp.ne.f32.partialorder %v188_v43, %v188_v43  ;;  %v180_v49 = vsel %vm179_vm8, 2139127680, %v176_v29 }
  0x24   :  { %vm85_vm13 = vmpackc.low %vm461_vm11, %vm461_vm11  ;;  %v87_v56 = vsel %vm461_vm11, 6, %v76_v48  ;;  %v181_v54 = vunpack.c.l.bf16 %v180_v49 }
  0x25   :  { %v86_v58 = vsel %vm85_vm13, %v81_v45, %v75_v50  ;;  %v199_v50 = vunpack.c.l.bf16 %v198_v44  ;;  %vm190_vm12 = vmpackc.low %vm189_vm10, %vm189_vm10 }
  0x26   :  { %v94_v59 = vunpack.c.l.bf16 %v86_v58 }
  0x27   :  { %vm200_vm14 = vcmp.ne.f32.partialorder %v199_v50, %v199_v50 }
  0x28   :  { %vm95_vm15 = vcmp.gt.f32.partialorder %v93_v57, %v94_v59  ;;  %v191_v57 = vsel %vm190_vm12, 2139127680, %v187_v37  ;;  %vm201_vm0 = vmpackc.low %vm200_vm14, %vm200_vm14  ;;  %v220_v59 = vld [vmem:[%s706_s1 + $0x4c] sm:$0xf] }
  0x29   :  { %vm96_vm1 = vmpackc.low %vm95_vm15, %vm95_vm15  ;;  %v98_v63 = vsel %vm95_vm15, 7, %v87_v56  ;;  %v192_v61 = vunpack.c.l.bf16 %v191_v57 }
  0x2a   :  { %v97_v1 = vsel %vm96_vm1, %v92_v52, %v86_v58  ;;  %v209_v52 = vld [vmem:[%s706_s1 + $0x48] sm:$0xf] }
  0x2b   :  { %v105_v2 = vunpack.c.l.bf16 %v97_v1  ;;  %v210_v58 = vunpack.c.l.bf16 %v209_v52 }
  0x2d   :  { %vm476_vm3 = vcmp.gt.f32.partialorder %v104_v0, %v105_v2  ;;  %vm211_vm2 = vcmp.ne.f32.partialorder %v210_v58, %v210_v58  ;;  %v202_v0 = vsel %vm201_vm0, 2139127680, %v198_v44 }
  0x2e   :  { %vm107_vm5 = vmpackc.low %vm476_vm3, %vm476_vm3  ;;  %v109_v7 = vsel %vm476_vm3, 8, %v98_v63  ;;  %v203_v4 = vunpack.c.l.bf16 %v202_v0 }
  0x2f   :  { %v108_v9 = vsel %vm107_vm5, %v103_v60, %v97_v1  ;;  %v221_v1 = vunpack.c.l.bf16 %v220_v59  ;;  %vm212_vm4 = vmpackc.low %vm211_vm2, %vm211_vm2 }
  0x30   :  { %v116_v10 = vunpack.c.l.bf16 %v108_v9 }
  0x31   :  { %vm222_vm6 = vcmp.ne.f32.partialorder %v221_v1, %v221_v1 }
  0x32   :  { %vm117_vm7 = vcmp.gt.f32.partialorder %v115_v8, %v116_v10  ;;  %vm223_vm8 = vmpackc.low %vm222_vm6, %vm222_vm6  ;;  %v242_v10 = vld [vmem:[%s706_s1 + $0x54] sm:$0xf] }
  0x33   :  { %vm118_vm9 = vmpackc.low %vm117_vm7, %vm117_vm7  ;;  %v120_v14 = vsel %vm117_vm7, 9, %v109_v7  ;;  %v213_v7 = vsel %vm212_vm4, 2139127680, %v209_v52 }
  0x34   :  { %v119_v16 = vsel %vm118_vm9, %v114_v3, %v108_v9  ;;  %v231_v3 = vld [vmem:[%s706_s1 + $0x50] sm:$0xf]  ;;  %v330_v9 = vld [vmem:[%s706_s1 + $0x74] sm:$0xf] }
  0x35   :  { %v127_v17 = vunpack.c.l.bf16 %v119_v16  ;;  %v232_v8 = vunpack.c.l.bf16 %v231_v3 }
  0x37   :  { %vm491_vm11 = vcmp.gt.f32.partialorder %v126_v15, %v127_v17  ;;  %vm233_vm10 = vcmp.ne.f32.partialorder %v232_v8, %v232_v8  ;;  %v243_v15 = vunpack.c.l.bf16 %v242_v10  ;;  %v253_v17 = vld [vmem:[%s706_s1 + $0x58] sm:$0xf] }
  0x38   :  { %vm129_vm13 = vmpackc.low %vm491_vm11, %vm491_vm11  ;;  %v131_v23 = vsel %vm491_vm11, 10, %v120_v14  ;;  %v224_v14 = vsel %vm223_vm8, 2139127680, %v220_v59 }
  0x39   :  { %v130_v25 = vsel %vm129_vm13, %v125_v11, %v119_v16  ;;  %v214_v11 = vunpack.c.l.bf16 %v213_v7  ;;  %vm234_vm12 = vmpackc.low %vm233_vm10, %vm233_vm10  ;;  %vm244_vm14 = vcmp.ne.f32.partialorder %v243_v15, %v243_v15  ;;  %v331_v16 = vunpack.c.l.bf16 %v330_v9 }
  0x3a   :  { %v138_v26 = vunpack.c.l.bf16 %v130_v25  ;;  %v235_v22 = vsel %vm234_vm12, 2139127680, %v231_v3  ;;  %vm245_vm0 = vmpackc.low %vm244_vm14, %vm244_vm14 }
  0x3b   :  { %v246_v29 = vsel %vm245_vm0, 2139127680, %v242_v10 }
  0x3c   :  { %vm139_vm15 = vcmp.gt.f32.partialorder %v137_v24, %v138_v26  ;;  %v236_v26 = vunpack.c.l.bf16 %v235_v22 }
  0x3d   :  { %vm140_vm1 = vmpackc.low %vm139_vm15, %vm139_vm15  ;;  %v142_v30 = vsel %vm139_vm15, 11, %v131_v23  ;;  %v254_v23 = vunpack.c.l.bf16 %v253_v17 }
  0x3e   :  { %v141_v32 = vsel %vm140_vm1, %v136_v18, %v130_v25  ;;  %v225_v18 = vunpack.c.l.bf16 %v224_v14  ;;  %v264_v25 = vld [vmem:[%s706_s1 + $0x5c] sm:$0xf] }
  0x3f   :  { %v149_v33 = vunpack.c.l.bf16 %v141_v32  ;;  %vm255_vm2 = vcmp.ne.f32.partialorder %v254_v23, %v254_v23 }
  0x41   :  { %vm506_vm3 = vcmp.gt.f32.partialorder %v148_v31, %v149_v33  ;;  %v247_v33 = vunpack.c.l.bf16 %v246_v29 }
  0x42   :  { %vm151_vm5 = vmpackc.low %vm506_vm3, %vm506_vm3  ;;  %v153_v38 = vsel %vm506_vm3, 12, %v142_v30  ;;  %v265_v30 = vunpack.c.l.bf16 %v264_v25 }
  0x43   :  { %v152_v40 = vsel %vm151_vm5, %v147_v27, %v141_v32  ;;  %v275_v32 = vld [vmem:[%s706_s1 + $0x60] sm:$0xf] }
  0x44   :  { %v160_v41 = vunpack.c.l.bf16 %v152_v40  ;;  %vm266_vm8 = vcmp.ne.f32.partialorder %v265_v30, %v265_v30  ;;  %v276_v37 = vunpack.c.l.bf16 %v275_v32 }
  0x45   :  { %vm267_vm10 = vmpackc.low %vm266_vm8, %vm266_vm8 }
  0x46   :  { %vm161_vm7 = vcmp.gt.f32.partialorder %v159_v39, %v160_v41  ;;  %v286_v39 = vld [vmem:[%s706_s1 + $0x64] sm:$0xf]  ;;  %v268_v43 = vsel %vm267_vm10, 2139127680, %v264_v25 }
  0x47   :  { %vm162_vm9 = vmpackc.low %vm161_vm7, %vm161_vm7  ;;  %v164_v45 = vsel %vm161_vm7, 13, %v153_v38  ;;  %v287_v44 = vunpack.c.l.bf16 %v286_v39 }
  0x48   :  { %v163_v47 = vsel %vm162_vm9, %v158_v34, %v152_v40 }
  0x49   :  { %v171_v48 = vunpack.c.l.bf16 %v163_v47 }
  0x4b   :  { %vm521_vm11 = vcmp.gt.f32.partialorder %v170_v46, %v171_v48  ;;  %v297_v46 = vld [vmem:[%s706_s1 + $0x68] sm:$0xf]  ;;  %v269_v48 = vunpack.c.l.bf16 %v268_v43 }
  0x4c   :  { %vm173_vm13 = vmpackc.low %vm521_vm11, %vm521_vm11  ;;  %v175_v53 = vsel %vm521_vm11, 14, %v164_v45  ;;  %v298_v52 = vunpack.c.l.bf16 %v297_v46 }
  0x4d   :  { %v174_v55 = vsel %vm173_vm13, %v169_v42, %v163_v47 }
  0x4e   :  { %v182_v56 = vunpack.c.l.bf16 %v174_v55  ;;  %vm299_vm8 = vcmp.ne.f32.partialorder %v298_v52, %v298_v52 }
  0x4f   :  { %vm300_vm10 = vmpackc.low %vm299_vm8, %vm299_vm8 }
  0x50   :  { %vm183_vm15 = vcmp.gt.f32.partialorder %v181_v54, %v182_v56 }
  0x51   :  { %vm184_vm1 = vmpackc.low %vm183_vm15, %vm183_vm15  ;;  %v536_v60 = vsel %vm183_vm15, 15, %v175_v53 }
  0x52   :  { %v185_v62 = vsel %vm184_vm1, %v180_v49, %v174_v55  ;;  %v308_v55 = vld [vmem:[%s706_s1 + $0x6c] sm:$0xf] }
  0x53   :  { %v193_v63 = vunpack.c.l.bf16 %v185_v62 }
  0x55   :  { %vm538_vm3 = vcmp.gt.f32.partialorder %v192_v61, %v193_v63  ;;  %v309_v61 = vunpack.c.l.bf16 %v308_v55 }
  0x56   :  { %vm195_vm5 = vmpackc.low %vm538_vm3, %vm538_vm3  ;;  %v197_v47 = vsel %vm538_vm3, 16, %v536_v60 }
  0x57   :  { %v196_v5 = vsel %vm195_vm5, %v191_v57, %v185_v62  ;;  %vm256_vm5 = vmpackc.low %vm255_vm2, %vm255_vm2  ;;  %vm288_vm2 = vcmp.ne.f32.partialorder %v287_v44, %v287_v44 }
  0x58   :  { %v204_v6 = vunpack.c.l.bf16 %v196_v5  ;;  %v257_v36 = vsel %vm256_vm5, 2139127680, %v253_v17 }
  0x59   :  { %v258_v40 = vunpack.c.l.bf16 %v257_v36 }
  0x5a   :  { %vm548_vm7 = vcmp.gt.f32.partialorder %v203_v4, %v204_v6  ;;  %v301_v6 = vsel %vm300_vm10, 2139127680, %v297_v46 }
  0x5b   :  { %vm206_vm9 = vmpackc.low %vm548_vm7, %vm548_vm7  ;;  %v208_v53 = vsel %vm548_vm7, 17, %v197_v47 }
  0x5c   :  { %v207_v12 = vsel %vm206_vm9, %v202_v0, %v196_v5  ;;  %v319_v0 = vld [vmem:[%s706_s1 + $0x70] sm:$0xf] }
  0x5d   :  { %v215_v13 = vunpack.c.l.bf16 %v207_v12 }
  0x5f   :  { %vm558_vm11 = vcmp.gt.f32.partialorder %v214_v11, %v215_v13  ;;  %v302_v11 = vunpack.c.l.bf16 %v301_v6 }
  0x60   :  { %vm217_vm13 = vmpackc.low %vm558_vm11, %vm558_vm11  ;;  %v219_v57 = vsel %vm558_vm11, 18, %v208_v53 }
  0x61   :  { %v218_v20 = vsel %vm217_vm13, %v213_v7, %v207_v12  ;;  %vm277_vm13 = vcmp.ne.f32.partialorder %v276_v37, %v276_v37  ;;  %v320_v7 = vunpack.c.l.bf16 %v319_v0  ;;  %v388_v12 = vmov 127  }
  0x62   :  { %v226_v21 = vunpack.c.l.bf16 %v218_v20  ;;  %vm278_vm0 = vmpackc.low %vm277_vm13, %vm277_vm13  ;;  %386 = vset.pattern.permute.xlu0 %v388_v12 }
  0x63   :  { %v279_v51 = vsel %vm278_vm0, 2139127680, %v275_v32  ;;  %vm321_vm0 = vcmp.ne.f32.partialorder %v320_v7, %v320_v7 }
  0x64   :  { %vm568_vm15 = vcmp.gt.f32.partialorder %v225_v18, %v226_v21  ;;  %v280_v56 = vunpack.c.l.bf16 %v279_v51 }
  0x65   :  { %vm228_vm1 = vmpackc.low %vm568_vm15, %vm568_vm15  ;;  %v230_v62 = vsel %vm568_vm15, 19, %v219_v57  ;;  %v365_v57 = vstv %s707_s0 }
  0x66   :  { %v229_v27 = vsel %vm228_vm1, %v224_v14, %v218_v20  ;;  %v341_v20 = vld [vmem:[%s706_s1 + $0x78] sm:$0xf] }
  0x67   :  { %v237_v28 = vunpack.c.l.bf16 %v229_v27 }
  0x69   :  { %vm578_vm4 = vcmp.gt.f32.partialorder %v236_v26, %v237_v28  ;;  %v342_v26 = vunpack.c.l.bf16 %v341_v20 }
  0x6a   :  { %vm239_vm6 = vmpackc.low %vm578_vm4, %vm578_vm4  ;;  %v241_v4 = vsel %vm578_vm4, 20, %v230_v62 }
  0x6b   :  { %v240_v34 = vsel %vm239_vm6, %v235_v22, %v229_v27  ;;  %vm289_vm6 = vmpackc.low %vm288_vm2, %vm288_vm2  ;;  %vm343_vm8 = vcmp.ne.f32.partialorder %v342_v26, %v342_v26 }
  0x6c   :  { %v248_v35 = vunpack.c.l.bf16 %v240_v34  ;;  %v290_v60 = vsel %vm289_vm6, 2139127680, %v286_v39  ;;  %vm332_vm6 = vcmp.ne.f32.partialorder %v331_v16, %v331_v16  ;;  %vm344_vm10 = vmpackc.low %vm343_vm8, %vm343_vm8 }
  0x6d   :  { %v291_v1 = vunpack.c.l.bf16 %v290_v60 }
  0x6e   :  { %vm588_vm9 = vcmp.gt.f32.partialorder %v247_v33, %v248_v35 }
  0x6f   :  { %vm250_vm12 = vmpackc.low %vm588_vm9, %vm588_vm9  ;;  %v252_v10 = vsel %vm588_vm9, 21, %v241_v4 }
  0x70   :  { %v251_v41 = vsel %vm250_vm12, %v246_v29, %v240_v34  ;;  %vm637_vm12 = vcmp.ne.f32.partialorder %v309_v61, %v309_v61  ;;  %vm322_vm9 = vmpackc.low %vm321_vm0, %vm321_vm0  ;;  %v352_v29 = vld [vmem:[%s706_s1 + $0x7c] sm:$0xf]  ;;  %s389_s1 = smov 1  }
  0x71   :  { %v259_v42 = vunpack.c.l.bf16 %v251_v41  ;;  %vm311_vm13 = vmpackc.low %vm637_vm12, %vm637_vm12  ;;  %v323_v25 = vsel %vm322_vm9, 2139127680, %v319_v0  ;;  %v353_v35 = vunpack.c.l.bf16 %v352_v29 }
  0x72   :  { %v312_v15 = vsel %vm311_vm13, 2139127680, %v308_v55  ;;  %v324_v30 = vunpack.c.l.bf16 %v323_v25 }
  0x73   :  { %vm598_vm14 = vcmp.gt.f32.partialorder %v258_v40, %v259_v42  ;;  %v313_v21 = vunpack.c.l.bf16 %v312_v15  ;;  %vm354_vm12 = vcmp.ne.f32.partialorder %v353_v35, %v353_v35 }
  0x74   :  { %vm261_vm1 = vmpackc.low %vm598_vm14, %vm598_vm14  ;;  %v263_v17 = vsel %vm598_vm14, 22, %v252_v10 }
  0x75   :  { %v262_v49 = vsel %vm261_vm1, %v257_v36, %v251_v41  ;;  %v345_v41 = vsel %vm344_vm10, 2139127680, %v341_v20  ;;  %vm355_vm13 = vmpackc.low %vm354_vm12, %vm354_vm12 }
  0x76   :  { %v270_v50 = vunpack.c.l.bf16 %v262_v49  ;;  %v356_v47 = vsel %vm355_vm13, 2139127680, %v352_v29 }
  0x78   :  { %vm613_vm5 = vcmp.gt.f32.partialorder %v269_v48, %v270_v50  ;;  %v13_v50 = vlaneseq }
  0x79   :  { %vm272_vm3 = vmpackc.low %vm613_vm5, %vm613_vm5  ;;  %v274_v22 = vsel %vm613_vm5, 23, %v263_v17 }
  0x7a   :  { %v273_v58 = vsel %vm272_vm3, %v268_v43, %v262_v49  ;;  %vm333_vm3 = vmpackc.low %vm332_vm6, %vm332_vm6  ;;  %v346_v43 = vunpack.c.l.bf16 %v345_v41  ;;  %v357_v49 = vunpack.c.l.bf16 %v356_v47  ;;  %v14_v54 = vshrl.u32 %v13_v50, 7 }
  0x7b   :  { %v281_v59 = vunpack.c.l.bf16 %v273_v58  ;;  %v334_v34 = vsel %vm333_vm3, 2139127680, %v330_v9 }
  0x7c   :  { %v335_v38 = vunpack.c.l.bf16 %v334_v34 }
  0x7d   :  { %vm627_vm7 = vcmp.gt.f32.partialorder %v280_v56, %v281_v59 }
  0x7e   :  { %vm283_vm11 = vmpackc.low %vm627_vm7, %vm627_vm7  ;;  %v285_v27 = vsel %vm627_vm7, 24, %v274_v22 }
  0x7f   :  { %v284_v2 = vsel %vm283_vm11, %v279_v51, %v273_v58 }
  0x80   :  { %v292_v5 = vunpack.c.l.bf16 %v284_v2 }
  0x82   :  { %vm643_vm15 = vcmp.gt.f32.partialorder %v291_v1, %v292_v5 }
  0x83   :  { %vm294_vm4 = vmpackc.low %vm643_vm15, %vm643_vm15  ;;  %v296_v32 = vsel %vm643_vm15, 25, %v285_v27 }
  0x84   :  { %v295_v13 = vsel %vm294_vm4, %v290_v60, %v284_v2  ;;  %v16_v60 = vand.u32 127, %v13_v50 }
  0x85   :  { %v303_v14 = vunpack.c.l.bf16 %v295_v13 }
  0x86   :  { %vm367_vm6 = vcmp.eq.s32.totalorder %v16_v60, 0 }
  0x87   :  { %vm660_vm1 = vcmp.gt.f32.partialorder %v302_v11, %v303_v14 }
  0x88   :  { %vm305_vm2 = vmpackc.low %vm660_vm1, %vm660_vm1  ;;  %v307_v37 = vsel %vm660_vm1, 26, %v296_v32 }
  0x89   :  { %v306_v23 = vsel %vm305_vm2, %v301_v6, %v295_v13  ;;  %vm364_vm2 = vcmp.eq.s32.totalorder %v14_v54, 0 }
  0x8a   :  { %v314_v24 = vunpack.c.l.bf16 %v306_v23 }
  0x8c   :  { %vm674_vm14 = vcmp.gt.f32.partialorder %v313_v21, %v314_v24 }
  0x8d   :  { %vm316_vm5 = vmpackc.low %vm674_vm14, %vm674_vm14  ;;  %v318_v42 = vsel %vm674_vm14, 27, %v307_v37 }
  0x8e   :  { %v317_v31 = vsel %vm316_vm5, %v312_v15, %v306_v23 }
  0x8f   :  { %v325_v33 = vunpack.c.l.bf16 %v317_v31 }
  0x91   :  { %vm686_vm7 = vcmp.gt.f32.partialorder %v324_v30, %v325_v33 }
  0x92   :  { %vm327_vm11 = vmpackc.low %vm686_vm7, %vm686_vm7  ;;  %v329_v44 = vsel %vm686_vm7, 28, %v318_v42 }
  0x93   :  { %v328_v39 = vsel %vm327_vm11, %v323_v25, %v317_v31 }
  0x94   :  { %v336_v40 = vunpack.c.l.bf16 %v328_v39 }
  0x96   :  { %vm337_vm15 = vcmp.gt.f32.partialorder %v335_v38, %v336_v40 }
  0x97   :  { %vm338_vm4 = vmpackc.low %vm337_vm15, %vm337_vm15  ;;  %v340_v48 = vsel %vm337_vm15, 29, %v329_v44 }
  0x98   :  { %v339_v45 = vsel %vm338_vm4, %v334_v34, %v328_v39 }
  0x99   :  { %v347_v46 = vunpack.c.l.bf16 %v339_v45 }
  0x9b   :  { %vm348_vm0 = vcmp.gt.f32.partialorder %v346_v43, %v347_v46 }
  0x9c   :  { %vm349_vm1 = vmpackc.low %vm348_vm0, %vm348_vm0  ;;  %v351_v52 = vsel %vm348_vm0, 30, %v340_v48 }
  0x9d   :  { %v350_v51 = vsel %vm349_vm1, %v345_v41, %v339_v45 }
  0x9e   :  { %v358_v53 = vunpack.c.l.bf16 %v350_v51 }
  0xa0   :  { %vm359_vm9 = vcmp.gt.f32.partialorder %v357_v49, %v358_v53 }
  0xa1   :  { %v360_v55 = vsel %vm359_vm9, 31, %v351_v52 }
  0xa2   :  { %361 = vrot.lane.b32.xlu0 %v360_v55, %s389_s1  ;;  %v363_v56 = vrot.slane %v360_v55, 7  ;;  %vm372_vm14 = vcmp.ne.s32.totalorder %v360_v55, 0 }
  0xa4   :  { %v366_v58 = vsel %vm364_vm2, %v365_v57, %v363_v56 }
  0xaa   :  { %369 = vperm.xlu0 %386, %v366_v58  }
 0x114   :  { %v362_v59 = vpop.permute.xlu0 %361 }
 0x11c   :  { %v370_v61 = vpop.permute.xlu0 %369 }
 0x11d   :  { %v371_v62 = vsel %vm367_vm6, %v370_v61, %v362_v59 }
 0x11e   :  { %vm373_vm3 = vcmp.ne.s32.totalorder %v360_v55, %v371_v62 }
 0x11f   :  { %vm374_vm5 = vmand %vm372_vm14, %vm373_vm3 }
 0x120   :  { %v375_v63 = vsel %vm374_vm5, 1, %v387_v19 }
 0x121   :  { %v376_v0 = vmul.u32 65536, %v375_v63 }
 0x123   :  { %v377_v1 = vadd.s32 %v376_v0, %v360_v55 }
 0x125   :  { %378 = vst [vmem:[%s708_s2] sm:$0xff] %v377_v1 }

</bundles_post_ra>
